<compile_context>
chip_gen: v5e
topology: v5e:2x2
jax: 0.10.0
libtpu: 0.0.40
codegen_flags: <defaults>
</compile_context>

<pallas_src>
import jax
import jax.numpy as jnp
from jax import lax
from jax.experimental import pallas as pl
from jax.experimental.pallas import tpu as pltpu


# ----------------------------------------------------------------------------
# Kernels
# ----------------------------------------------------------------------------
def _conv1x1_bn_silu_kernel(x_ref, w_ref, b_ref, o_ref):
    # x_ref: (C1, T) bf16, w_ref: (c_, C1) bf16 (BN scale folded in),
    # b_ref: (c_, 1) f32, o_ref: (c_, T) f32.
    y = jnp.dot(w_ref[...], x_ref[...], preferred_element_type=jnp.float32)
    y = y + b_ref[...]                       # per-channel bias, broadcast over lanes
    o_ref[...] = (y * jax.nn.sigmoid(y)).astype(o_ref.dtype)   # SiLU


def _dwconv5x5_bn_silu_kernel(x_ref, w_ref, b_ref, o_ref):
    # x_ref: (c_, H+4, W+4) f32 zero-padded, w_ref: (25, c_, 1, 1) f32
    # (BN scale folded in), b_ref: (c_, 1, 1) f32, o_ref: (c_, H, W) f32.
    c, H, W = o_ref.shape
    x = x_ref[...].astype(jnp.float32)
    w = w_ref[...]                           # (25, c, 1, 1)
    acc = jnp.zeros((c, H, W), dtype=jnp.float32)
    for dh in range(5):                      # fully unrolled 5x5 taps
        for dw in range(5):
            acc = acc + x[:, dh:dh + H, dw:dw + W] * w[5 * dh + dw]
    y = acc + b_ref[...]
    o_ref[...] = (y * jax.nn.sigmoid(y)).astype(o_ref.dtype)   # SiLU


# ----------------------------------------------------------------------------
# Wrapper
# ----------------------------------------------------------------------------
def _pick_hw_tile(hw, max_tile=2048):
    """Largest multiple of 128 that divides hw (capped); full hw if irregular."""
    if hw % 128 != 0:
        return hw
    t = min(max_tile, hw)
    t -= t % 128
    while hw % t != 0:
        t -= 128
    return t


def gsconv_forward(x, p, eps=1e-5, max_hw_tile=2048):
    """GSConv forward (k=1, s=1 defaults). x: (B, C1, H, W) f32 NCHW."""
    B, C1, H, W = x.shape
    c_ = p["w1"].shape[0]
    HW = H * W

    # ---------------- cv1: 1x1 conv (channel GEMM) + BN + SiLU ----------------
    inv1 = 1.0 / jnp.sqrt(p["v1"] + eps)
    scale1 = p["g1"] * inv1
    w1f = (p["w1"].reshape(c_, C1) * scale1[:, None]).astype(jnp.bfloat16)
    bias1 = (p["b1"] - p["m1"] * scale1).astype(jnp.float32).reshape(c_, 1)

    x_flat = x.reshape(B, C1, HW).astype(jnp.bfloat16)   # NCHW kept, no transpose
    T = _pick_hw_tile(HW, max_hw_tile)
    grid1 = (B, HW // T)

    x1_flat = pl.pallas_call(
        _conv1x1_bn_silu_kernel,
        out_shape=jax.ShapeDtypeStruct((B, c_, HW), jnp.float32),
        grid=grid1,
        in_specs=[
            pl.BlockSpec((None, C1, T), lambda b, j: (b, 0, j)),
            pl.BlockSpec((c_, C1), lambda b, j: (0, 0)),     # weights stay resident
            pl.BlockSpec((c_, 1), lambda b, j: (0, 0)),
        ],
        out_specs=pl.BlockSpec((None, c_, T), lambda b, j: (b, 0, j)),
        compiler_params=pltpu.CompilerParams(
            dimension_semantics=("parallel", "parallel"),
            vmem_limit_bytes=32 * 1024 * 1024),
        cost_estimate=pl.CostEstimate(
            flops=2 * B * HW * C1 * c_,
            transcendentals=B * HW * c_,
            bytes_accessed=(x_flat.size * 2 + w1f.size * 2
                            + bias1.size * 4 + B * c_ * HW * 4)),
    )(x_flat, w1f, bias1)
    x1 = x1_flat.reshape(B, c_, H, W)

    # ------------- cv2: 5x5 depthwise conv (groups=c_) + BN + SiLU ------------
    inv2 = 1.0 / jnp.sqrt(p["v2"] + eps)
    scale2 = p["g2"] * inv2
    # (c_, 1, 5, 5) -> (25, c_, 1, 1) with BN scale folded in.
    w2f = (p["w2"].reshape(c_, 25) * scale2[:, None]).T.reshape(25, c_, 1, 1)
    w2f = w2f.astype(jnp.float32)
    bias2 = (p["b2"] - p["m2"] * scale2).astype(jnp.float32).reshape(c_, 1, 1)

    x1p = jnp.pad(x1, ((0, 0), (0, 0), (2, 2), (2, 2)))   # 'same' pad for k=5

    # TODO(synk): for very large H*W, tile the spatial dims with explicit halos
    # instead of a full (H+4, W+4) block per batch.
    x3 = pl.pallas_call(
        _dwconv5x5_bn_silu_kernel,
        out_shape=jax.ShapeDtypeStruct((B, c_, H, W), jnp.float32),
        grid=(B,),
        in_specs=[
            pl.BlockSpec((None, c_, H + 4, W + 4), lambda b: (b, 0, 0, 0)),
            pl.BlockSpec((25, c_, 1, 1), lambda b: (0, 0, 0, 0)),
            pl.BlockSpec((c_, 1, 1), lambda b: (0, 0, 0)),
        ],
        out_specs=pl.BlockSpec((None, c_, H, W), lambda b: (b, 0, 0, 0)),
        compiler_params=pltpu.CompilerParams(
            dimension_semantics=("parallel",),
            vmem_limit_bytes=32 * 1024 * 1024),
    )(x1p, w2f, bias2)

    # ---------------- concat + 2-group channel shuffle (data movement) --------
    x2 = jnp.concatenate([x1, x3], axis=1)
    # Equivalent to torch: reshape(b*n//2,2,hw).permute(1,0,2)... cat(y[0],y[1])
    return jnp.concatenate([x2[:, ::2], x2[:, 1::2]], axis=1)


# ----------------------------------------------------------------------------
# Pure-JAX reference (mirrors the PyTorch module, eval-mode BN, f32)
# ----------------------------------------------------------------------------
def _conv_bn_silu_ref(x, w, gamma, beta, mean, var, eps=1e-5, groups=1, pad=0):
    y = lax.conv_general_dilated(
        x, w, window_strides=(1, 1), padding=((pad, pad), (pad, pad)),
        dimension_numbers=("NCHW", "OIHW", "NCHW"), feature_group_count=groups)
    inv = 1.0 / jnp.sqrt(var + eps)
    y = (y - mean[None, :, None, None]) * inv[None, :, None, None]
    y = y * gamma[None, :, None, None] + beta[None, :, None, None]
    return y * jax.nn.sigmoid(y)


def gsconv_reference(x, p, eps=1e-5):
    c_ = p["w1"].shape[0]
    x1 = _conv_bn_silu_ref(x, p["w1"], p["g1"], p["b1"], p["m1"], p["v1"], eps)
    x3 = _conv_bn_silu_ref(x1, p["w2"], p["g2"], p["b2"], p["m2"], p["v2"], eps,
                           groups=c_, pad=2)
    x2 = jnp.concatenate([x1, x3], axis=1)
    B, n, H, W = x2.shape
    y = x2.reshape(B * n // 2, 2, H * W)      # exact mirror of the torch shuffle
    y = jnp.transpose(y, (1, 0, 2))
    y = y.reshape(2, B, n // 2, H, W)
    return jnp.concatenate([y[0], y[1]], axis=1)


# ----------------------------------------------------------------------------
if __name__ == "__main__":
    B, C1, H, W = 2, 8, 16, 16
    C2 = 16
    c_ = C2 // 2

    key = jax.random.PRNGKey(0)
    ks = jax.random.split(key, 12)

    x = jax.random.normal(ks[0], (B, C1, H, W), dtype=jnp.float32)
    # cv1: Conv2d(C1, c_, k=1, bias=False); cv2: Conv2d(c_, c_, 5, groups=c_)
    w1 = 0.1 * jax.random.normal(ks[1], (c_, C1, 1, 1), dtype=jnp.float32)
    w2 = 0.1 * jax.random.normal(ks[2], (c_, 1, 5, 5), dtype=jnp.float32)
    # BatchNorm2d params / running stats (eval mode), deterministic synthetic.
    params = dict(
        w1=w1, w2=w2,
        g1=1.0 + 0.1 * jax.random.normal(ks[3], (c_,), dtype=jnp.float32),
        b1=0.1 * jax.random.normal(ks[4], (c_,), dtype=jnp.float32),
        m1=0.05 * jax.random.normal(ks[5], (c_,), dtype=jnp.float32),
        v1=1.0 + 0.1 * jax.random.uniform(ks[6], (c_,), dtype=jnp.float32),
        g2=1.0 + 0.1 * jax.random.normal(ks[7], (c_,), dtype=jnp.float32),
        b2=0.1 * jax.random.normal(ks[8], (c_,), dtype=jnp.float32),
        m2=0.05 * jax.random.normal(ks[9], (c_,), dtype=jnp.float32),
        v2=1.0 + 0.1 * jax.random.uniform(ks[10], (c_,), dtype=jnp.float32),
    )

    out = gsconv_forward(x, params)
    out = jax.block_until_ready(out)

    ref = gsconv_reference(x, params)
    assert out.shape == (B, C2, H, W), out.shape
    max_err = float(jnp.max(jnp.abs(out - ref)))
    # bf16 GEMM inputs (f32 accumulation) => slightly looser tolerance.
    assert jnp.allclose(out, ref, atol=3e-2, rtol=3e-2), f"max abs err {max_err}"

    print("KERNEL_OK")
</pallas_src>

<mosaic_0001>
module attributes {stable_mosaic.version = 11 : i64} {
  func.func @_conv1x1_bn_silu_kernel(%arg0: i32, %arg1: i32, %arg2: memref<1x8x256xbf16, #tpu.memory_space<vmem>>, %arg3: memref<8x8xbf16, #tpu.memory_space<vmem>>, %arg4: memref<8x1xf32, #tpu.memory_space<vmem>>, %arg5: memref<1x8x256xf32, #tpu.memory_space<vmem>>) attributes {dimension_semantics = [#tpu.dimension_semantics<parallel>, #tpu.dimension_semantics<parallel>], iteration_bounds = array<i64: 2, 1>, scalar_prefetch = 0 : i64, scratch_operands = 0 : i64, tpu.core_type = #tpu.core_type<tc>, window_params = [{transform_indices = @transform_0, window_bounds = array<i64: 1, 8, 256>}, {pipeline_mode = #tpu.pipeline_mode<synchronous>, transform_indices = @transform_1, window_bounds = array<i64: 8, 8>}, {pipeline_mode = #tpu.pipeline_mode<synchronous>, transform_indices = @transform_2, window_bounds = array<i64: 8, 1>}, {transform_indices = @transform_3, window_bounds = array<i64: 1, 8, 256>}]} {
    %c0 = arith.constant 0 : index
    %c0_0 = arith.constant 0 : index
    %0 = vector.load %arg3[%c0, %c0_0] : memref<8x8xbf16, #tpu.memory_space<vmem>>, vector<8x8xbf16>
    %c0_1 = arith.constant 0 : index
    %c0_2 = arith.constant 0 : index
    %c0_3 = arith.constant 0 : index
    %1 = vector.load %arg2[%c0_1, %c0_2, %c0_3] : memref<1x8x256xbf16, #tpu.memory_space<vmem>>, vector<1x8x256xbf16>
    %2 = vector.shape_cast %1 : vector<1x8x256xbf16> to vector<8x256xbf16>
    %cst = arith.constant dense<0.000000e+00> : vector<8x256xf32>
    %3 = tpu.matmul %0, %2, %cst {dimension_numbers = #tpu.dot_dimension_numbers<[1], [0], [0], [1], [0, 0, 1, 1], [], []>} : vector<8x8xbf16>, vector<8x256xbf16>, vector<8x256xf32> -> vector<8x256xf32>
    %c0_4 = arith.constant 0 : index
    %c0_5 = arith.constant 0 : index
    %4 = vector.load %arg4[%c0_4, %c0_5] : memref<8x1xf32, #tpu.memory_space<vmem>>, vector<8x1xf32>
    %5 = vector.broadcast %4 : vector<8x1xf32> to vector<8x256xf32>
    %6 = arith.addf %3, %5 : vector<8x256xf32>
    %7 = arith.negf %6 : vector<8x256xf32>
    %8 = math.exp %7 : vector<8x256xf32>
    %cst_6 = arith.constant 1.000000e+00 : f32
    %9 = vector.broadcast %cst_6 : f32 to vector<8x256xf32>
    %10 = arith.addf %9, %8 : vector<8x256xf32>
    %11 = arith.divf %9, %10 : vector<8x256xf32>
    %12 = arith.mulf %6, %11 : vector<8x256xf32>
    %c0_7 = arith.constant 0 : index
    %c0_8 = arith.constant 0 : index
    %c0_9 = arith.constant 0 : index
    %13 = vector.load %arg5[%c0_7, %c0_8, %c0_9] : memref<1x8x256xf32, #tpu.memory_space<vmem>>, vector<1x8x256xf32>
    %14 = vector.shape_cast %13 : vector<1x8x256xf32> to vector<8x256xf32>
    %15 = vector.shape_cast %12 : vector<8x256xf32> to vector<1x8x256xf32>
    tpu.vector_store %arg5[%c0_7, %c0_8, %c0_9], %15 {strides = array<i32>} : memref<1x8x256xf32, #tpu.memory_space<vmem>>, vector<1x8x256xf32>,
    return
  }
  func.func @transform_0(%arg0: i32, %arg1: i32) -> (i32, i32, i32) {
    %c0_i32 = arith.constant 0 : i32
    %c0_i32_0 = arith.constant 0 : i32
    return %arg0, %c0_i32, %arg1 : i32, i32, i32
  }
  func.func @transform_1(%arg0: i32, %arg1: i32) -> (i32, i32) {
    %c0_i32 = arith.constant 0 : i32
    %c0_i32_0 = arith.constant 0 : i32
    %c0_i32_1 = arith.constant 0 : i32
    return %c0_i32, %c0_i32_0 : i32, i32
  }
  func.func @transform_2(%arg0: i32, %arg1: i32) -> (i32, i32) {
    %c0_i32 = arith.constant 0 : i32
    %c0_i32_0 = arith.constant 0 : i32
    %c0_i32_1 = arith.constant 0 : i32
    return %c0_i32, %c0_i32_0 : i32, i32
  }
  func.func @transform_3(%arg0: i32, %arg1: i32) -> (i32, i32, i32) {
    %c0_i32 = arith.constant 0 : i32
    %c0_i32_0 = arith.constant 0 : i32
    return %arg0, %c0_i32, %arg1 : i32, i32, i32
  }
}

</mosaic_0001>

<bundles_post_ra>
// kernel: tpu_custom_call.1
= control target key start
LH: loop header
LB: loop body
LE: loop exit
PB: predicated region body
PF: predicated region fallthrough
CT: control target
= control target key end

     0   :  { %8 = vsyncpa [#allocation3], 0  ;;  %s760_s0 = inlined_call_operand.hbm [shape: bf16[2,8,256], index: 0, kind: input, shape index: {}]   ;;  %s761_s1 = inlined_call_operand.vmem [shape: bf16[8,8], index: 1, kind: input, shape index: {}]   ;;  %s762_s2 = inlined_call_operand.vmem [shape: f32[8,1], index: 2, kind: input, shape index: {}]   ;;  %s763_s3 = inlined_call_operand.hbm [shape: f32[2,8,256], index: 3, kind: output, shape index: {}]  }
   0x1   :  { %10 = vsyncpa [#allocation3 + $0x1], 0 }
   0x2   :  { %11 = vsyncpa [#allocation4], 0 }
   0x3   :  { %13 = vsyncpa [#allocation4 + $0x1], 0  ;;  %s633_s12 = smov 0   ;;  %s635_s13 = smov 0  }
   0x4   :  { %s637_s14 = smov 0   ;;  %s639_s15 = smov 0  }
   0x5   :  { %s641_s16 = smov 0   ;;  %s643_s17 = smov 0  }
   0x6 LB: > { %s405_s18 = sadd.s32 4294967295, %s610_s17   ;;  %s406_s19 = sadd.s32 4294967294, %s610_s17   ;;  %s610_s17 = sphi %s643_s17, %s19_s17   ;;  %s606_s16 = sphi %s641_s16, %s772_s16   ;;  %s602_s15 = sphi %s639_s15, %s771_s15   ;;  %s598_s14 = sphi %s637_s14, %s770_s14   ;;  %s594_s13 = sphi %s635_s13, %s769_s13   ;;  %s590_s12 = sphi %s633_s12, %s768_s12  }
   0x7   : > { %s31_s20 = sadd.s32 1, %s606_s16  ;;  %s40_s21 = sadd.s32 1, %s598_s14 }
   0x8   : > { %p33_p0 = scmp.ge.s32.totalorder %s31_s20, 2  ;;  %p47_p1 = scmp.ne.s32.totalorder %s598_s14, %s594_s13 }
   0x9   : > { %p48_p2 = scmp.eq.s32.totalorder %s610_s17, 0  ;;  %p53_p3 = scmp.ne.s32.totalorder %s594_s13, %s590_s12 }
   0xa   : > { %s774_s20 = smov (%p33_p0, %s31_s20), 0  ;;  %p54_p5 = scmp.eq.s32.totalorder %s405_s18, 0 }
   0xb   : > { %p674_p4 = por %p48_p2, %p47_p1  ;;  %s35_s23 = ssub.s32 %s606_s16, %s774_s20 }
   0xc   : > { %p121_p6 = scmp.eq.s32.totalorder %s405_s18, 1  ;;  %p38_p7 = scmp.eq.s32.totalorder %s35_s23, 0 }
   0xd   : > { %p680_p8 = por %p54_p5, %p53_p3  ;;  %p127_p10 = scmp.eq.s32.totalorder %s406_s19, 1 }
   0xe   : > { %p684_p9 = por %p121_p6, %p47_p1  ;;  %p408_p12 = scmp.ge.s32.totalorder %s610_s17, 2 }
   0xf   : > { %s689_s26 = scalar_select %p38_p7, %s598_s14, %s40_s21  }
  0x10   : > { %p691_p11 = por %p127_p10, %p53_p3  ;;  %p438_p13 = scmp.lt.s32.totalorder %s610_s17, 2 }
  0x11   : > { %s153_s28 = sand.u32 1, %s598_s14   ;;  %s424_s30 = sshll.u32 %s606_s16, 3 }
  0x12   : > { %s409_s29 = sshll.u32 %s153_s28, 3  ;;  %s164_s6 = scalar_lea.hbm %s760_s0, %s424_s30 }
  0x13   : > { %s157_s7 = scalar_lea.vmem [#allocation2], %s409_s29  ;;  %s166_s9 = sshll.u32 %s164_s6, 4  ;;  %s167_s9 = int_to_ptr.hbm [resolvable:$true] %s166_s9 }
  0x14   : > { %s168_s8 = sshll.u32 %s157_s7, 4  ;;  %p431_p0 = pnand %p438_p13, %p674_p4  ;;  %s169_s8 = int_to_ptr.vmem [resolvable:$true] %s168_s8 }
  0x15   : > { %p412_p1 = scmp.ge.s32.totalorder %s610_s17, 1  ;;  %p173_p2 = scmp.lt.s32.totalorder %s610_s17, 3 }
  0x16   : > { %s154_s10 = scalar_lea.sflag [#allocation3], %s153_s28 }
  0x17   : > { %433 = dma.hbm_to_vmem [thread:$0]  (!%p431_p0), %s167_s9, 128, %s169_s8, %s154_s10  }
  0x18   : > { %p174_p3 = pnand %p412_p1, %p173_p2 }
  0x19   : > { %s707_s11 = sand.u32 (!%p174_p3), 1, %s594_s13  }
  0x1a   : > { %177 = sbr.rel (%p174_p3) target bundleno = 203 (0xcb), region = 32  ;;  %s413_s18 = sshll.u32 (!%p174_p3), %s707_s11, 3 }
  0x1b   : > { %s180_s19 = scalar_lea.sflag (!%p174_p3), [#allocation3], %s707_s11  ;;  %s183_s21 = scalar_lea.vmem (!%p174_p3), [#allocation2], %s413_s18 }
  0x1f   : > { %581 = dma.done.wait (%p680_p8), %s180_s19, 128  }
  0x20   : > { %583 = vsyncadd (%p680_p8), %s180_s19, 4294967168  ;;  %v612_v0 = vmov 0   ;;  %v211_v1 = vld [vmem:[%s183_s21] sm:$0xff]  ;;  %vm227_vm0 = vcmask 1043456   ;;  %vm223_vm1 = vcmask 64512   ;;  %s414_s29 = sshll.u32 %s707_s11, 4 }
  0x21   : > { %489 = vset.pattern.permute.xlu0 %v612_v0  ;;  %v212_v2 = vld [vmem:[%s762_s2] sm:$0xff]  ;;  %v219_v3 = vunpack.c.l.b16 %v211_v1  ;;  %v220_v4 = vunpack.c.h.b16 %v211_v1  ;;  %s425_s30 = sshll.u32 %s602_s15, 4  ;;  %s206_s15 = scalar_lea.vmem [#allocation5], %s414_s29 }
  0x22   : > { %215 = vperm.xlu0 %489, %v212_v2   ;;  %v210_v9 = vld [vmem:[%s761_s1] sm:$0xf]  ;;  %s316_s6 = scalar_lea.hbm %s763_s3, %s425_s30  ;;  %s318_s7 = sshll.u32 %s206_s15, 4  ;;  %s319_s7 = int_to_ptr.vmem [resolvable:$true] %s318_s7 }
  0x23   : > { %v221_v5 = vpack.c.b16 %v219_v3, %v219_v3  ;;  %v222_v6 = vpack.c.b16 %v220_v4, %v220_v4  ;;  %s320_s8 = sshll.u32 %s316_s6, 4  ;;  %s303_s9 = scalar_lea.sflag [#allocation4], %s707_s11  ;;  %s321_s8 = int_to_ptr.hbm [resolvable:$true] %s320_s8 }
  0x24   : > { %s542_s10 = sshra.s32 %s321_s8, 4  ;;  %s548_s22 = scalar_lea.hbm %s763_s3, 32  ;;  %s543_s10 = int_to_ptr.hbm [resolvable:$true] %s542_s10 }
  0x25   : > { %v229_v7 = vsel %vm227_vm0, %v221_v5, 0  ;;  %v232_v8 = vsel %vm227_vm0, %v222_v6, 0  ;;  %s544_s18 = scalar_lea.hbm %s543_s10, 16  ;;  %p549_p7 = scmp.lt.s32.totalorder %s543_s10, %s763_s3 }
  0x26   : > { %241 = vmatpush.bf16.msra.mxu0 %v229_v7  ;;  %254 = vmatpush.bf16.msra.mxu1 %v232_v8  ;;  %p545_p4 = scmp.ne.s32.totalorder %s543_s10, %s544_s18  ;;  %p550_p8 = scmp.lt.s32.totalorder %s548_s22, %s544_s18 }
  0x28   : > { %p546_p5 = pnand %p545_p4, %p684_p9  ;;  %p551_p10 = por %p550_p8, %p549_p7 }
  0x29   : > { %415 = vmatmul.msk.bf16.vlgmr.msra.gmra.mxu0 %vm223_vm1, %v210_v9  ;;  %416 = vmatmul.msk.bf16.vlgmr.msra.gmra.mxu1 %vm223_vm1, %v210_v9 }
  0x2a   : > { %p547_p6 = pneg %p546_p5 }
  0x2c   : > { %p552_p13 = pnand %p551_p10, %p547_p6 }
  0x94   : > { %v216_v10 = vpop.permute.xlu0 %215 }
  0xa6   : > { %v243_v11 = vpop.f32.mrf.mxu0  ;;  %v256_v12 = vpop.f32.mrf.mxu1 }
  0xa7   : > { %v244_v13 = vadd.f32 %v243_v11, %v216_v10  ;;  %v257_v14 = vadd.f32 %v256_v12, %v216_v10 }
  0xa9   : > { %v417_v15 = vmul.f32 -1.442695, %v244_v13  ;;  %v418_v16 = vmul.f32 -1.442695, %v257_v14 }
  0xab   : > { %490 = vpow2.f32 %v417_v15 }
  0xac   : > { %492 = vpow2.f32 %v418_v16 }
  0xae   : > { %v245_v17 = vpop.f32.mrf.mxu0  ;;  %v258_v18 = vpop.f32.mrf.mxu1 }
  0xb1   : > { %v491_v19 = vpop.eup %490 }
  0xb2   : > { %v493_v20 = vpop.eup %492  ;;  %v266_v21 = vadd.f32 1.0, %v491_v19 }
  0xb3   : > { %v267_v22 = vadd.f32 1.0, %v493_v20 }
  0xb4   : > { %494 = vrcp.f32 %v266_v21  ;;  %v279_v28 = vand.u32 2147483648, %v266_v21  ;;  %v277_v31 = vand.u32 2147483647, %v266_v21  ;;  %vm273_vm4 = vweird.f32 %v266_v21 }
  0xb5   : > { %496 = vrcp.f32 %v267_v22  ;;  %v294_v32 = vand.u32 2147483648, %v267_v22  ;;  %v292_v34 = vand.u32 2147483647, %v267_v22  ;;  %vm288_vm6 = vweird.f32 %v267_v22 }
  0xb6   : > { %v280_v36 = vor.u32 1.1754944e-38, %v279_v28  ;;  %vm278_vm7 = vcmp.eq.f32.partialorder %v277_v31, 8.507059e+37 }
  0xb7   : > { %v295_v39 = vor.u32 1.1754944e-38, %v294_v32  ;;  %vm293_vm9 = vcmp.eq.f32.partialorder %v292_v34, 8.507059e+37 }
  0xba   : > { %v495_v23 = vpop.eup %494 }
  0xbb   : > { %v497_v24 = vpop.eup %496  ;;  %v269_v25 = vmul.f32 %v495_v23, %v266_v21  ;;  %vm274_vm2 = vweird.f32 %v495_v23 }
  0xbc   : > { %v284_v26 = vmul.f32 %v497_v24, %v267_v22  ;;  %vm289_vm3 = vweird.f32 %v497_v24  ;;  %vm275_vm5 = vmor %vm273_vm4, %vm274_vm2 }
  0xbd   : > { %v270_v27 = vsub.f32 1.0, %v269_v25  ;;  %vm290_vm8 = vmor %vm288_vm6, %vm289_vm3 }
  0xbe   : > { %v285_v29 = vsub.f32 1.0, %v284_v26 }
  0xbf   : > { %v271_v30 = vmul.f32 %v495_v23, %v270_v27 }
  0xc0   : > { %v286_v33 = vmul.f32 %v497_v24, %v285_v29 }
  0xc1   : > { %v272_v35 = vadd.f32 %v495_v23, %v271_v30 }
  0xc2   : > { %v287_v37 = vadd.f32 %v497_v24, %v286_v33 }
  0xc3   : > { %v276_v38 = vsel %vm275_vm5, %v495_v23, %v272_v35 }
  0xc4   : > { %v281_v40 = vsel %vm278_vm7, %v280_v36, %v276_v38  ;;  %v291_v41 = vsel %vm290_vm8, %v497_v24, %v287_v37 }
  0xc5   : > { %v298_v42 = vmul.f32 %v281_v40, %v244_v13  ;;  %v296_v43 = vsel %vm293_vm9, %v295_v39, %v291_v41 }
  0xc6   : > { %v299_v44 = vmul.f32 %v296_v43, %v257_v14 }
  0xc7   : > { %300 = vst [vmem:[%s206_s15] sm:$0xff] %v298_v42 }
  0xc8   : > { %301 = vst [vmem:[%s206_s15 + $0x8] sm:$0xff] %v299_v44 }
  0xc9   : > { %555 = shalt.err (!%p552_p13)
}
  0xca   : > { %428 = dma.vmem_to_hbm [thread:$0]  (%p684_p9), %s319_s7, 256, %s321_s8, %s303_s9  }
  0xcb PF: > { %s332_s11 = sand.u32 1, %s590_s12   ;;  %p435_p0 = pnand %p408_p12, %p691_p11 }
  0xcc   : > { %s333_s24 = scalar_lea.sflag [#allocation4], %s332_s11 }
  0xcd   : > { %p436_p1 = pneg %p435_p0 }
  0xcf   : > { %585 = dma.done.wait (%p436_p1), %s333_s24, 256  }
  0xd0   : > { %587 = vsyncadd (%p436_p1), %s333_s24, 4294967040  ;;  %s19_s17 = sadd.s32 1, %s610_s17   ;;  %s768_s12 = smov %s594_s13 }
  0xd1   : > { %p16_p2 = scmp.ge.s32.totalorder %s19_s17, 4   ;;  %s769_s13 = smov %s598_s14 }
  0xd2   : > { %s770_s14 = smov %s689_s26  ;;  %s771_s15 = smov %s606_s16 }
  0xd3   : > { %s772_s16 = smov %s774_s20  ;;  %18 = sbr.rel (!%p16_p2) target bundleno = 6 (0x6), region = 77 }
  0xd8   :  { %339 = vsyncpa [#allocation3], 1 }
  0xd9   :  { %341 = vsyncpa [#allocation3 + $0x1], 1 }
  0xda   :  { %342 = vsyncpa [#allocation4], 1 }
  0xdb   :  { %344 = vsyncpa [#allocation4 + $0x1], 1 }

</bundles_post_ra>
